<compile_context>
chip_gen: v5e
topology: v5e:2x2
jax: 0.10.0
libtpu: 0.0.40
codegen_flags: <defaults>
</compile_context>

<pallas_src>
import math

import jax
import jax.numpy as jnp
from jax.experimental import pallas as pl
from jax.experimental.pallas import tpu as pltpu


# --------------------------- PE buffer (host, once) ---------------------------

def make_circular_pe(node_size, d_model, dtype=jnp.float32):
    """Exactly mirrors the buffer built in CircularPositionalEncoding.__init__."""
    assert d_model % 2 == 0, "d_model must be even (as the torch module assumes)"
    position = jnp.arange(node_size, dtype=jnp.float32)[:, None]               # (N, 1)
    div_term = jnp.exp(
        jnp.arange(0, d_model, 2, dtype=jnp.float32) * (-(math.log(10000.0) / d_model))
    )                                                                           # (D/2,)
    phase = position * div_term + 2.0 * math.pi * position / node_size          # (N, D/2)
    pe = jnp.zeros((node_size, d_model), dtype=jnp.float32)
    pe = pe.at[:, 0::2].set(jnp.sin(phase))
    pe = pe.at[:, 1::2].set(jnp.cos(phase))
    return pe.astype(dtype)


# ------------------------------- Pallas kernels -------------------------------

def _pe_add_kernel(x_ref, pe_ref, o_ref):
    # x_ref/o_ref: (TB, TC); pe_ref: (1, TC) broadcast over the sublane (batch) axis.
    o_ref[...] = x_ref[...] + pe_ref[...]


def _pe_add_dropout_kernel(x_ref, pe_ref, m_ref, o_ref):
    # m_ref holds the pre-scaled inverted-dropout keep mask (0 or 1/keep_prob).
    o_ref[...] = (x_ref[...] + pe_ref[...]) * m_ref[...]


# ------------------------------ tile selection --------------------------------

_LANE = 128
_SUBLANE = 8
_VMEM_WORKING_SET_BYTES = 12 * 1024 * 1024   # conservative; fits default scoped VMEM everywhere


def _choose_tiles(B, F, itemsize, n_streamed):
    """Pick (TB, TC) so that 2 * n_streamed * TB*TC*itemsize <= budget.

    TC is a multiple of 128 (or the full extent F); TB is a multiple of 8 (or
    the full extent B).  Ragged last blocks are handled by a cdiv grid.
    """
    budget_elems = max(
        _SUBLANE * _LANE,
        _VMEM_WORKING_SET_BYTES // (2 * n_streamed * max(1, itemsize)),
    )
    max_tc = max(_LANE, (budget_elems // _SUBLANE) // _LANE * _LANE)
    TC = F if F <= max_tc else max_tc            # full extent is always legal
    rows = max(1, budget_elems // TC)
    if rows >= B or B <= _SUBLANE:
        TB = B                                   # full extent is always legal
    else:
        TB = max(_SUBLANE, (rows // _SUBLANE) * _SUBLANE)
    return TB, TC


# --------------------------------- wrapper -----------------------------------

def circular_positional_encoding(x, pe, *, dropout_p=0.0, training=False, rng=None):
    """x: (B, S, D) float; pe: (node_size, D) constant buffer (as built above)."""
    B, S, D = x.shape
    assert pe.shape[0] >= S and pe.shape[1] == D
    F = S * D

    # pe[:, :x.size(1)], flattened and laid out lane-dense alongside x.
    # (torch would promote to pe's f32; here pe is cast to x.dtype -- documented.)
    pe_flat = pe[:S].astype(x.dtype).reshape(1, F)
    x2 = x.reshape(B, F)                                    # free, metadata-only reshape

    use_dropout = training and dropout_p > 0.0
    n_streamed = 3 if use_dropout else 2                    # x (+ mask) + out, double buffered
    itemsize = jnp.dtype(x.dtype).itemsize
    TB, TC = _choose_tiles(B, F, itemsize, n_streamed)
    nB, nC = pl.cdiv(B, TB), pl.cdiv(F, TC)

    # Put the axis with more tiles outermost (megacore-friendly; when the lane
    # axis is outer the PE block is only re-fetched nC times in total).
    if nC >= nB:
        grid = (nC, nB)
        xmap = lambda c, b: (b, c)
        pemap = lambda c, b: (0, c)
    else:
        grid = (nB, nC)
        xmap = lambda b, c: (b, c)
        pemap = lambda b, c: (0, c)

    cparams = pltpu.CompilerParams(
        dimension_semantics=("parallel", "parallel"),
        vmem_limit_bytes=32 * 1024 * 1024,
    )
    out_shape = jax.ShapeDtypeStruct((B, F), x.dtype)
    x_spec = pl.BlockSpec((TB, TC), xmap)
    pe_spec = pl.BlockSpec((1, TC), pemap)
    out_spec = pl.BlockSpec((TB, TC), xmap)

    if not use_dropout:
        out2 = pl.pallas_call(
            _pe_add_kernel,
            out_shape=out_shape,
            grid=grid,
            in_specs=[x_spec, pe_spec],
            out_specs=out_spec,
            compiler_params=cparams,
        )(x2, pe_flat)
        return out2.reshape(B, S, D)

    # Training mode: fused PE add + inverted dropout via a pre-scaled keep mask.
    if rng is None:
        rng = jax.random.PRNGKey(0)
    keep_prob = 1.0 - float(dropout_p)
    keep = jax.random.bernoulli(rng, keep_prob, (B, S, D)).astype(x.dtype)
    mask2 = (keep * jnp.asarray(1.0 / keep_prob, x.dtype)).reshape(B, F)

    out2 = pl.pallas_call(
        _pe_add_dropout_kernel,
        out_shape=out_shape,
        grid=grid,
        in_specs=[x_spec, pe_spec, x_spec],       # mask tiled exactly like x
        out_specs=out_spec,
        compiler_params=cparams,
    )(x2, pe_flat, mask2)
    return out2.reshape(B, S, D)


# ---------------------------------- driver ------------------------------------

if __name__ == "__main__":
    B, S, D, NODE_SIZE, P_DROP = 2, 8, 32, 16, 0.1

    key = jax.random.PRNGKey(0)
    kx, kd = jax.random.split(key)
    x = jax.random.normal(kx, (B, S, D), jnp.float32)
    pe = make_circular_pe(NODE_SIZE, D)

    ref = x + pe[None, :S, :]

    # ---- eval mode (dropout == identity): validate against pure-JAX reference
    out = circular_positional_encoding(x, pe, dropout_p=P_DROP, training=False)
    out = jax.block_until_ready(out)
    assert out.shape == (B, S, D)
    assert jnp.allclose(out, ref, rtol=1e-6, atol=1e-6), (
        f"max abs err {jnp.max(jnp.abs(out - ref))}")

    # ---- training mode: fused PE add + inverted dropout (deterministic mask)
    out_tr = circular_positional_encoding(x, pe, dropout_p=P_DROP, training=True, rng=kd)
    out_tr = jax.block_until_ready(out_tr)
    assert out_tr.shape == (B, S, D)
    keep = jax.random.bernoulli(kd, 1.0 - P_DROP, (B, S, D)).astype(x.dtype)
    ref_tr = ref * (keep * (1.0 / (1.0 - P_DROP)))
    assert jnp.allclose(out_tr, ref_tr, rtol=1e-5, atol=1e-5), (
        f"max abs err {jnp.max(jnp.abs(out_tr - ref_tr))}")

    # TODO(synk): the dropout mask uses jax.random (host-side), not
    # torch.nn.Dropout's RNG stream, so it is distribution-equivalent only.

    print("KERNEL_OK")
</pallas_src>

<mosaic_0001>
module attributes {stable_mosaic.version = 11 : i64} {
  func.func @_pe_add_kernel(%arg0: i32, %arg1: i32, %arg2: memref<2x256xf32, #tpu.memory_space<vmem>>, %arg3: memref<1x256xf32, #tpu.memory_space<vmem>>, %arg4: memref<2x256xf32, #tpu.memory_space<vmem>>) attributes {dimension_semantics = [#tpu.dimension_semantics<parallel>, #tpu.dimension_semantics<parallel>], iteration_bounds = array<i64: 1, 1>, scalar_prefetch = 0 : i64, scratch_operands = 0 : i64, tpu.core_type = #tpu.core_type<tc>, window_params = [{transform_indices = @transform_0, window_bounds = array<i64: 2, 256>}, {transform_indices = @transform_1, window_bounds = array<i64: 1, 256>}, {transform_indices = @transform_2, window_bounds = array<i64: 2, 256>}]} {
    %c0 = arith.constant 0 : index
    %c0_0 = arith.constant 0 : index
    %0 = vector.load %arg2[%c0, %c0_0] : memref<2x256xf32, #tpu.memory_space<vmem>>, vector<2x256xf32>
    %c0_1 = arith.constant 0 : index
    %c0_2 = arith.constant 0 : index
    %1 = vector.load %arg3[%c0_1, %c0_2] : memref<1x256xf32, #tpu.memory_space<vmem>>, vector<1x256xf32>
    %2 = vector.broadcast %1 : vector<1x256xf32> to vector<2x256xf32>
    %3 = arith.addf %0, %2 : vector<2x256xf32>
    %c0_3 = arith.constant 0 : index
    %c0_4 = arith.constant 0 : index
    %4 = vector.load %arg4[%c0_3, %c0_4] : memref<2x256xf32, #tpu.memory_space<vmem>>, vector<2x256xf32>
    tpu.vector_store %arg4[%c0_3, %c0_4], %3 {strides = array<i32>} : memref<2x256xf32, #tpu.memory_space<vmem>>, vector<2x256xf32>,
    return
  }
  func.func @transform_0(%arg0: i32, %arg1: i32) -> (i32, i32) {
    %c0_i32 = arith.constant 0 : i32
    return %arg1, %arg0 : i32, i32
  }
  func.func @transform_1(%arg0: i32, %arg1: i32) -> (i32, i32) {
    %c0_i32 = arith.constant 0 : i32
    %c0_i32_0 = arith.constant 0 : i32
    return %c0_i32, %arg0 : i32, i32
  }
  func.func @transform_2(%arg0: i32, %arg1: i32) -> (i32, i32) {
    %c0_i32 = arith.constant 0 : i32
    return %arg1, %arg0 : i32, i32
  }
}

</mosaic_0001>

<bundles_post_ra>
// kernel: tpu_custom_call.1
= control target key start
LH: loop header
LB: loop body
LE: loop exit
PB: predicated region body
PF: predicated region fallthrough
CT: control target
= control target key end

     0   :  { %7 = vsyncpa [#allocation3], 0  ;;  %s177_s0 = inlined_call_operand.hbm [shape: f32[2,256], index: 0, kind: input, shape index: {}]   ;;  %s178_s1 = inlined_call_operand.hbm [shape: f32[1,256], index: 1, kind: input, shape index: {}]   ;;  %s179_s2 = inlined_call_operand.hbm [shape: f32[2,256], index: 2, kind: output, shape index: {}]  }
   0x1   :  { %8 = vsyncpa [#allocation6], 0 }
   0x2   :  { %9 = vsyncpa [#allocation4], 0  ;;  %s15_s11 = sshll.u32 %s177_s0, 4  ;;  %s150_s12 = smov [#allocation2]   ;;  %s16_s11 = int_to_ptr.hbm [resolvable:$true] %s15_s11 }
   0x3   :  { %s17_s13 = sshll.u32 %s150_s12, 4  ;;  %s26_s16 = sshll.u32 %s178_s1, 4  ;;  %s18_s13 = int_to_ptr.vmem [resolvable:$true] %s17_s13  ;;  %s27_s16 = int_to_ptr.hbm [resolvable:$true] %s26_s16 }
   0x4   :  { %20 = dma.hbm_to_vmem [thread:$0]  %s16_s11, 64, %s18_s13, [#allocation3]  }
   0x5   :  { %s151_s17 = smov [#allocation5]  }
   0x6   :  { %s28_s18 = sshll.u32 %s151_s17, 4  ;;  %s29_s18 = int_to_ptr.vmem [resolvable:$true] %s28_s18 }
   0x7   :  { %31 = dma.hbm_to_vmem [thread:$0]  %s27_s16, 32, %s29_s18, [#allocation6]  }
   0x8   :  { %144 = dma.done.wait [#allocation3], 64  }
   0x9   :  { %145 = vsyncadd [#allocation3], 4294967232 }
   0xa   :  { %146 = dma.done.wait [#allocation6], 32  }
   0xb   :  { %147 = vsyncadd [#allocation6], 4294967264  ;;  %v41_v0 = vld [vmem:[#allocation5] sm:$0x3]  ;;  %vm46_vm0 = vcmask 1041408   ;;  %s152_s0 = smov [#allocation7]  }
   0xc   :  { %v43_v1 = vperm.slane %v41_v0, 0  ;;  %v44_v2 = vperm.slane %v41_v0, 1  ;;  %v40_v3 = vld [vmem:[#allocation2] sm:$0xf]  ;;  %s56_s19 = sshll.u32 %s152_s0, 4  ;;  %s58_s21 = sshll.u32 %s179_s2, 4  ;;  %s57_s19 = int_to_ptr.vmem [resolvable:$true] %s56_s19  ;;  %s59_s21 = int_to_ptr.hbm [resolvable:$true] %s58_s21 }
   0xe   :  { %v45_v4 = vrot.slane %v44_v2, 6 }
  0x10   :  { %v47_v5 = vsel %vm46_vm0, %v43_v1, %v45_v4 }
  0x11   :  { %v49_v6 = vadd.f32 %v47_v5, %v40_v3 }
  0x13   :  { %50 = vst [vmem:[#allocation7] sm:$0xf] %v49_v6 }
  0x14   :  { %61 = dma.vmem_to_hbm [thread:$0]  %s57_s19, 64, %s59_s21, [#allocation4]  }
  0x15   :  { %148 = dma.done.wait [#allocation4], 64  }
  0x16   :  { %149 = vsyncadd [#allocation4], 4294967232 }
  0x17   :  { %66 = vsyncpa [#allocation3], 1 }
  0x18   :  { %67 = vsyncpa [#allocation6], 1 }
  0x19   :  { %68 = vsyncpa [#allocation4], 1 }

</bundles_post_ra>
